<compile_context>
chip_gen: v6e
topology: v6e:2x2x1
jax: 0.10.0
libtpu: 0.0.40
codegen_flags: <defaults>
</compile_context>

<pallas_src>
import math

import jax
import jax.numpy as jnp
from jax.experimental import pallas as pl
from jax.experimental.pallas import tpu as pltpu

LANE = 128
_MASK = -1e30  # baked into b3's padded lanes


def _round_up(x, m):
    return (x + m - 1) // m * m


def segnet_kernel(x_ref, w1_ref, b1_ref, w2_ref, b2_ref, w3_ref, b3_ref, o_ref):
    # fc1 + ReLU: x arrives f32 and is cast to bf16 at the MXU input
    # (f32 accumulation); bias add / ReLU / softmax stay f32 (v5e-friendly).
    x = x_ref[...].astype(jnp.bfloat16)
    h1 = jnp.dot(x, w1_ref[...], preferred_element_type=jnp.float32)
    h1 = jnp.maximum(h1 + b1_ref[...], 0.0)

    # fc2 + ReLU
    h2 = jnp.dot(h1.astype(jnp.bfloat16), w2_ref[...],
                 preferred_element_type=jnp.float32)
    h2 = jnp.maximum(h2 + b2_ref[...], 0.0)

    # fc3 + softmax over the (padded-to-128-lane) feature axis.  The padded
    # lanes are masked via b3 == -1e30, so no iota/where is needed here.
    logits = jnp.dot(h2.astype(jnp.bfloat16), w3_ref[...],
                     preferred_element_type=jnp.float32)
    logits = logits + b3_ref[...]

    m = jnp.max(logits, axis=-1, keepdims=True)
    e = jnp.exp(logits - m)
    denom = jnp.sum(e, axis=-1, keepdims=True)
    # Exact f32 reciprocal on the (TB, 1) column keeps row sums == 1
    # (the approx EUP reciprocal was not accurate enough for the check).
    o_ref[...] = (e * (1.0 / denom)).astype(o_ref.dtype)


def _pick_batch_tile(B):
    if B <= 128:
        return B  # single full block; equals the array dim, so always legal
    # Keep >= 2 grid steps (v7x: 2 TensorCores share the "parallel" axis) but
    # grow the tile up to 512 rows to amortize ~0.35us/step overhead (v6e/v5e).
    for cand in (512, 256, 128):
        if B >= 2 * cand:
            return cand
    return 128


def seg_net_forward(x, params, nb_cities):
    """x: (B, nb_cities^2 + 2*nb_cities) f32 -> (B, nb_cities) softmax probs."""
    w1, b1, w2, b2, w3, b3 = params
    B, in1 = x.shape
    Hp = w1.shape[1]
    Np = w3.shape[1]

    TB = _pick_batch_tile(B)
    num_tiles = pl.cdiv(B, TB)

    # Weights/biases: constant index_map -> stay resident in VMEM across steps.
    resident = lambda a: pl.BlockSpec(a.shape, lambda i: (0, 0))

    flops = 2 * B * (in1 * Hp + Hp * Hp + Hp * Np)
    bytes_accessed = (x.size * 4
                      + (w1.size + w2.size + w3.size) * 2
                      + (b1.size + b2.size + b3.size) * 4
                      + B * Np * 4)
    cost = pl.CostEstimate(flops=flops, transcendentals=B * Np,
                           bytes_accessed=bytes_accessed)

    # Scoped-VMEM limit sized from the actual buffers (+ headroom).  The
    # defaults (16/32 MiB) would bite long before physical VMEM at larger
    # nb_cities; cap at 60 MiB so it is valid on v7x too.
    weight_bytes = sum(int(a.nbytes) for a in (w1, b1, w2, b2, w3, b3))
    io_bytes = TB * in1 * 4 + TB * Np * 4
    act_bytes = 6 * TB * Hp * 4
    vmem_limit = 2 * weight_bytes + 2 * io_bytes + act_bytes + (4 << 20)
    vmem_limit = int(min(max(vmem_limit, 16 << 20), 60 << 20))

    out = pl.pallas_call(
        segnet_kernel,
        out_shape=jax.ShapeDtypeStruct((B, Np), jnp.float32),
        grid=(num_tiles,),
        in_specs=[
            pl.BlockSpec((TB, in1), lambda i: (i, 0)),  # x tile walks the batch
            resident(w1), resident(b1),
            resident(w2), resident(b2),
            resident(w3), resident(b3),
        ],
        out_specs=pl.BlockSpec((TB, Np), lambda i: (i, 0)),  # lane-dense output
        compiler_params=pltpu.CompilerParams(
            dimension_semantics=("parallel",),
            vmem_limit_bytes=vmem_limit),
        cost_estimate=cost,
    )(x, w1, b1, w2, b2, w3, b3)

    return out[:, :nb_cities]


def init_params(key, nb_cities):
    """PyTorch nn.Linear-style init (U(-1/sqrt(fan_in), +1/sqrt(fan_in))).

    Weights are stored transposed vs PyTorch, i.e. (in, out), in bf16, with
    output dims zero-padded to a multiple of 128 lanes (fc1's input dim is
    left unpadded).  Biases are f32 (1, out_pad); b3's padded lanes hold -1e30
    so the softmax mask is baked into the bias add.
    """
    sq = nb_cities * nb_cities
    in1 = sq + 2 * nb_cities
    hidden = 2 * sq
    out3 = nb_cities

    Hp = _round_up(hidden, LANE)
    Np = _round_up(out3, LANE)

    keys = jax.random.split(key, 6)

    def linear(kw, kb, fan_in, fan_out, in_rows, out_cols, bias_pad_value=0.0):
        bound = 1.0 / math.sqrt(fan_in)
        w = jax.random.uniform(kw, (fan_in, fan_out), jnp.float32, -bound, bound)
        b = jax.random.uniform(kb, (fan_out,), jnp.float32, -bound, bound)
        w_p = jnp.zeros((in_rows, out_cols), jnp.bfloat16)
        w_p = w_p.at[:fan_in, :fan_out].set(w.astype(jnp.bfloat16))
        b_p = jnp.full((1, out_cols), bias_pad_value, jnp.float32)
        b_p = b_p.at[0, :fan_out].set(b)
        return w_p, b_p

    w1, b1 = linear(keys[0], keys[1], in1, hidden, in1, Hp)
    w2, b2 = linear(keys[2], keys[3], hidden, hidden, Hp, Hp)
    w3, b3 = linear(keys[4], keys[5], hidden, out3, Hp, Np,
                    bias_pad_value=_MASK)
    return (w1, b1, w2, b2, w3, b3)


if __name__ == "__main__":
    nb_cities = 8                   # fc1: 80 -> 128, fc2: 128 -> 128, fc3: 128 -> 8
    batch = 256                     # grid=(2,) of 128-row tiles (keeps 2 TCs busy on v7x)
    in_features = nb_cities * nb_cities + 2 * nb_cities   # 80

    key = jax.random.PRNGKey(0)
    k_params, k_x = jax.random.split(key)
    params = init_params(k_params, nb_cities)
    x = jax.random.normal(k_x, (batch, in_features), jnp.float32)

    out = jax.block_until_ready(seg_net_forward(x, params, nb_cities))

    # Pure-JAX f32 reference using the same (bf16-stored) parameters.
    w1, b1, w2, b2, w3, b3 = params
    h = jnp.maximum(x @ w1.astype(jnp.float32) + b1, 0.0)
    h = jnp.maximum(h @ w2.astype(jnp.float32) + b2, 0.0)
    logits = (h @ w3.astype(jnp.float32))[:, :nb_cities] + b3[0, :nb_cities]
    ref = jax.nn.softmax(logits, axis=1)

    assert out.shape == (batch, nb_cities)
    row_sums = jnp.sum(out, axis=1)
    assert bool(jnp.allclose(row_sums, jnp.ones_like(row_sums), atol=1e-3)), row_sums
    assert bool(jnp.allclose(out, ref, atol=2e-2)), float(jnp.max(jnp.abs(out - ref)))

    print("KERNEL_OK")
</pallas_src>

<mosaic_0001>
module attributes {stable_mosaic.version = 11 : i64} {
  func.func @segnet_kernel(%arg0: i32, %arg1: memref<128x80xf32, #tpu.memory_space<vmem>>, %arg2: memref<80x128xbf16, #tpu.memory_space<vmem>>, %arg3: memref<1x128xf32, #tpu.memory_space<vmem>>, %arg4: memref<128x128xbf16, #tpu.memory_space<vmem>>, %arg5: memref<1x128xf32, #tpu.memory_space<vmem>>, %arg6: memref<128x128xbf16, #tpu.memory_space<vmem>>, %arg7: memref<1x128xf32, #tpu.memory_space<vmem>>, %arg8: memref<128x128xf32, #tpu.memory_space<vmem>>) attributes {dimension_semantics = [#tpu.dimension_semantics<parallel>], iteration_bounds = array<i64: 2>, scalar_prefetch = 0 : i64, scratch_operands = 0 : i64, tpu.core_type = #tpu.core_type<tc>, window_params = [{transform_indices = @transform_0, window_bounds = array<i64: 128, 80>}, {pipeline_mode = #tpu.pipeline_mode<synchronous>, transform_indices = @transform_1, window_bounds = array<i64: 80, 128>}, {pipeline_mode = #tpu.pipeline_mode<synchronous>, transform_indices = @transform_2, window_bounds = array<i64: 1, 128>}, {pipeline_mode = #tpu.pipeline_mode<synchronous>, transform_indices = @transform_3, window_bounds = array<i64: 128, 128>}, {pipeline_mode = #tpu.pipeline_mode<synchronous>, transform_indices = @transform_4, window_bounds = array<i64: 1, 128>}, {pipeline_mode = #tpu.pipeline_mode<synchronous>, transform_indices = @transform_5, window_bounds = array<i64: 128, 128>}, {pipeline_mode = #tpu.pipeline_mode<synchronous>, transform_indices = @transform_6, window_bounds = array<i64: 1, 128>}, {transform_indices = @transform_7, window_bounds = array<i64: 128, 128>}]} {
    %c0 = arith.constant 0 : index
    %c0_0 = arith.constant 0 : index
    %0 = vector.load %arg1[%c0, %c0_0] : memref<128x80xf32, #tpu.memory_space<vmem>>, vector<128x80xf32>
    %1 = arith.truncf %0 : vector<128x80xf32> to vector<128x80xbf16>
    %c0_1 = arith.constant 0 : index
    %c0_2 = arith.constant 0 : index
    %2 = vector.load %arg2[%c0_1, %c0_2] : memref<80x128xbf16, #tpu.memory_space<vmem>>, vector<80x128xbf16>
    %cst = arith.constant dense<0.000000e+00> : vector<128x128xf32>
    %3 = tpu.matmul %1, %2, %cst {dimension_numbers = #tpu.dot_dimension_numbers<[1], [0], [0], [1], [0, 0, 1, 1], [], []>} : vector<128x80xbf16>, vector<80x128xbf16>, vector<128x128xf32> -> vector<128x128xf32>
    %c0_3 = arith.constant 0 : index
    %c0_4 = arith.constant 0 : index
    %4 = vector.load %arg3[%c0_3, %c0_4] : memref<1x128xf32, #tpu.memory_space<vmem>>, vector<1x128xf32>
    %5 = vector.broadcast %4 : vector<1x128xf32> to vector<128x128xf32>
    %6 = arith.addf %3, %5 : vector<128x128xf32>
    %cst_5 = arith.constant 0.000000e+00 : f32
    %7 = vector.broadcast %cst_5 : f32 to vector<128x128xf32>
    %8 = arith.maximumf %6, %7 : vector<128x128xf32>
    %9 = arith.truncf %8 : vector<128x128xf32> to vector<128x128xbf16>
    %c0_6 = arith.constant 0 : index
    %c0_7 = arith.constant 0 : index
    %10 = vector.load %arg4[%c0_6, %c0_7] : memref<128x128xbf16, #tpu.memory_space<vmem>>, vector<128x128xbf16>
    %cst_8 = arith.constant dense<0.000000e+00> : vector<128x128xf32>
    %11 = tpu.matmul %9, %10, %cst_8 {dimension_numbers = #tpu.dot_dimension_numbers<[1], [0], [0], [1], [0, 0, 1, 1], [], []>} : vector<128x128xbf16>, vector<128x128xbf16>, vector<128x128xf32> -> vector<128x128xf32>
    %c0_9 = arith.constant 0 : index
    %c0_10 = arith.constant 0 : index
    %12 = vector.load %arg5[%c0_9, %c0_10] : memref<1x128xf32, #tpu.memory_space<vmem>>, vector<1x128xf32>
    %13 = vector.broadcast %12 : vector<1x128xf32> to vector<128x128xf32>
    %14 = arith.addf %11, %13 : vector<128x128xf32>
    %cst_11 = arith.constant 0.000000e+00 : f32
    %15 = vector.broadcast %cst_11 : f32 to vector<128x128xf32>
    %16 = arith.maximumf %14, %15 : vector<128x128xf32>
    %17 = arith.truncf %16 : vector<128x128xf32> to vector<128x128xbf16>
    %c0_12 = arith.constant 0 : index
    %c0_13 = arith.constant 0 : index
    %18 = vector.load %arg6[%c0_12, %c0_13] : memref<128x128xbf16, #tpu.memory_space<vmem>>, vector<128x128xbf16>
    %cst_14 = arith.constant dense<0.000000e+00> : vector<128x128xf32>
    %19 = tpu.matmul %17, %18, %cst_14 {dimension_numbers = #tpu.dot_dimension_numbers<[1], [0], [0], [1], [0, 0, 1, 1], [], []>} : vector<128x128xbf16>, vector<128x128xbf16>, vector<128x128xf32> -> vector<128x128xf32>
    %c0_15 = arith.constant 0 : index
    %c0_16 = arith.constant 0 : index
    %20 = vector.load %arg7[%c0_15, %c0_16] : memref<1x128xf32, #tpu.memory_space<vmem>>, vector<1x128xf32>
    %21 = vector.broadcast %20 : vector<1x128xf32> to vector<128x128xf32>
    %22 = arith.addf %19, %21 : vector<128x128xf32>
    %cst_17 = arith.constant dense<0xFF800000> : vector<128xf32>
    %23 = vector.multi_reduction <maximumf>, %22, %cst_17 [1] : vector<128x128xf32> to vector<128xf32>
    %24 = vector.shape_cast %23 : vector<128xf32> to vector<128x1xf32>
    %25 = vector.broadcast %24 : vector<128x1xf32> to vector<128x128xf32>
    %26 = arith.subf %22, %25 : vector<128x128xf32>
    %27 = math.exp %26 : vector<128x128xf32>
    %cst_18 = arith.constant dense<0.000000e+00> : vector<128xf32>
    %28 = vector.multi_reduction <add>, %27, %cst_18 [1] : vector<128x128xf32> to vector<128xf32>
    %29 = vector.shape_cast %28 : vector<128xf32> to vector<128x1xf32>
    %cst_19 = arith.constant 1.000000e+00 : f32
    %30 = vector.broadcast %cst_19 : f32 to vector<128x1xf32>
    %31 = arith.divf %30, %29 : vector<128x1xf32>
    %32 = vector.broadcast %31 : vector<128x1xf32> to vector<128x128xf32>
    %33 = arith.mulf %27, %32 : vector<128x128xf32>
    %c0_20 = arith.constant 0 : index
    %c0_21 = arith.constant 0 : index
    %34 = vector.load %arg8[%c0_20, %c0_21] : memref<128x128xf32, #tpu.memory_space<vmem>>, vector<128x128xf32>
    tpu.vector_store %arg8[%c0_20, %c0_21], %33 {strides = array<i32>} : memref<128x128xf32, #tpu.memory_space<vmem>>, vector<128x128xf32>,
    return
  }
  func.func @transform_0(%arg0: i32) -> (i32, i32) {
    %c0_i32 = arith.constant 0 : i32
    %c0_i32_0 = arith.constant 0 : i32
    return %arg0, %c0_i32 : i32, i32
  }
  func.func @transform_1(%arg0: i32) -> (i32, i32) {
    %c0_i32 = arith.constant 0 : i32
    %c0_i32_0 = arith.constant 0 : i32
    %c0_i32_1 = arith.constant 0 : i32
    return %c0_i32, %c0_i32_0 : i32, i32
  }
  func.func @transform_2(%arg0: i32) -> (i32, i32) {
    %c0_i32 = arith.constant 0 : i32
    %c0_i32_0 = arith.constant 0 : i32
    %c0_i32_1 = arith.constant 0 : i32
    return %c0_i32, %c0_i32_0 : i32, i32
  }
  func.func @transform_3(%arg0: i32) -> (i32, i32) {
    %c0_i32 = arith.constant 0 : i32
    %c0_i32_0 = arith.constant 0 : i32
    %c0_i32_1 = arith.constant 0 : i32
    return %c0_i32, %c0_i32_0 : i32, i32
  }
  func.func @transform_4(%arg0: i32) -> (i32, i32) {
    %c0_i32 = arith.constant 0 : i32
    %c0_i32_0 = arith.constant 0 : i32
    %c0_i32_1 = arith.constant 0 : i32
    return %c0_i32, %c0_i32_0 : i32, i32
  }
  func.func @transform_5(%arg0: i32) -> (i32, i32) {
    %c0_i32 = arith.constant 0 : i32
    %c0_i32_0 = arith.constant 0 : i32
    %c0_i32_1 = arith.constant 0 : i32
    return %c0_i32, %c0_i32_0 : i32, i32
  }
  func.func @transform_6(%arg0: i32) -> (i32, i32) {
    %c0_i32 = arith.constant 0 : i32
    %c0_i32_0 = arith.constant 0 : i32
    %c0_i32_1 = arith.constant 0 : i32
    return %c0_i32, %c0_i32_0 : i32, i32
  }
  func.func @transform_7(%arg0: i32) -> (i32, i32) {
    %c0_i32 = arith.constant 0 : i32
    %c0_i32_0 = arith.constant 0 : i32
    return %arg0, %c0_i32 : i32, i32
  }
}

</mosaic_0001>

<bundles_post_ra>
// kernel: tpu_custom_call.1
= control target key start
LH: loop header
LB: loop body
LE: loop exit
PB: predicated region body
PF: predicated region fallthrough
CT: control target
= control target key end

     0   :  { %12 = vsyncpa [#allocation3], 0  ;;  %s1857_s0 = inlined_call_operand.vmem [shape: f32[256,80], index: 0, kind: input, shape index: {}]   ;;  %s1858_s1 = inlined_call_operand.vmem [shape: bf16[80,128], index: 1, kind: input, shape index: {}]   ;;  %s1859_s2 = inlined_call_operand.vmem [shape: f32[1,128], index: 2, kind: input, shape index: {}]   ;;  %s1860_s3 = inlined_call_operand.vmem [shape: bf16[128,128], index: 3, kind: input, shape index: {}]   ;;  %s1861_s4 = inlined_call_operand.vmem [shape: f32[1,128], index: 4, kind: input, shape index: {}]   ;;  %s1862_s5 = inlined_call_operand.vmem [shape: bf16[128,128], index: 5, kind: input, shape index: {}]   ;;  %s1863_s6 = inlined_call_operand.vmem [shape: f32[1,128], index: 6, kind: input, shape index: {}]   ;;  %s1864_s7 = inlined_call_operand.hbm [shape: f32[256,128], index: 7, kind: output, shape index: {}]  }
   0x1   :  { %14 = vsyncpa [#allocation3 + $0x1], 0  ;;  %s1537_s24 = smov 0   ;;  %s1539_s25 = smov 0  }
   0x2   :  { %s1541_s26 = smov 0   ;;  %s1543_s27 = smov 0  }
   0x3 LB: > { %s1558_s28 = sadd.s32 4294967295, %s1492_s27   ;;  %s1110_s29 = sadd.s32 4294967294, %s1492_s27   ;;  %s1492_s27 = sphi %s1543_s27, %s1870_s27   ;;  %s1488_s26 = sphi %s1541_s26, %s1869_s26   ;;  %s1484_s25 = sphi %s1539_s25, %s1868_s25   ;;  %s1480_s24 = sphi %s1537_s24, %s1867_s24  }
   0x4   : > { %s1562_s30 = sadd.s32 1, %s1492_s27   ;;  %s179_s8 = sadd.s32 1, %s1488_s26 }
   0x5   : > { %s176_s9 = ssub.s32 %s1492_s27, %s1562_s30  ;;  %p189_p0 = scmp.ne.s32.totalorder %s1488_s26, %s1484_s25 }
   0x6   : > { %p177_p1 = scmp.eq.s32.totalorder %s176_s9, 0  ;;  %p190_p2 = scmp.eq.s32.totalorder %s1558_s28, 1 }
   0x7   : > { %p195_p3 = scmp.ne.s32.totalorder %s1484_s25, %s1480_s24  ;;  %p196_p4 = scmp.eq.s32.totalorder %s1110_s29, 1 }
   0x8   : > { %s1573_s10 = scalar_select %p177_p1, %s1488_s26, %s179_s8  }
   0x9   : > { %p1575_p5 = por %p190_p2, %p189_p0  ;;  %p1579_p6 = por %p196_p4, %p195_p3 }
   0xa   : > { %p1113_p7 = scmp.ge.s32.totalorder %s1492_s27, 1  ;;  %p241_p8 = scmp.lt.s32.totalorder %s1492_s27, 3 }
   0xc   : > { %p242_p9 = pnand %p1113_p7, %p241_p8 }
   0xd   : > { %s1115_s15 = sshll.u32 (!%p242_p9), %s1558_s28, 4  ;;  %s270_s29 = sand.u32 (!%p242_p9), 1, %s1484_s25  }
   0xe   : > { %245 = sbr.rel (%p242_p9) target bundleno = 1005 (0x3ed), region = 48  ;;  %p274_p10 = scmp.lt.s32.totalorder (!%p242_p9), %s1115_s15, 31 }
   0xf   : > { %s1114_s9 = sshll.u32 (!%p242_p9), %s270_s29, 7  ;;  %s1154_s14 = sshll.u32 (!%p242_p9), %s1558_s28, 11 }
  0x10   : > { %s1773_s13 = scalar_lea.vmem (!%p242_p9), [#allocation2], %s1114_s9  ;;  %s1809_s17 = scalar_lea.hbm (!%p242_p9), %s1864_s7, %s1154_s14 }
  0x11   : > { %s1817_s28 = scalar_lea.sflag (!%p242_p9), [#allocation3], %s270_s29  ;;  %s1494_s19 = smov (!%p242_p9), [#allocation2]  }
  0x13   : > { %v1347_v0 = vld [vmem:[%s1858_s1 + $0x20] sm:$0xff]   ;;  %v1348_v1 = vld [vmem:[%s1858_s1 + $0x18] sm:$0xff]   ;;  %s1872_s15 = smov (!%p274_p10, %s1115_s15), 31  ;;  %v1349_v2 = vld [vmem:[%s1858_s1 + $0x10] sm:$0xff]   ;;  %vm352_vm0 = vcmask 654336  }
  0x14   : > { %1200 = vmatprep.subr.bf16.mxu0 %v1347_v0  ;;  %s1116_s20 = sshll.u32 %s1872_s15, 3  ;;  %v1352_v3 = vld [vmem:[%s1860_s3 + $0x38] sm:$0xff]   ;;  %v1353_v4 = vld [vmem:[%s1860_s3 + $0x30] sm:$0xff]   ;;  %v1350_v7 = vld [vmem:[%s1858_s1 + $0x8] sm:$0xff]   ;;  %s1048_s15 = sshll.u32 %s1773_s13, 4  ;;  %s1811_s15 = int_to_ptr.vmem [resolvable:$true] %s1048_s15 }
  0x15   : > { %1201 = vmatpush3.bf16.msra.mxu0 %v1347_v0  ;;  %s1601_s8 = scalar_lea.vmem %s1857_s0, %s1116_s20  ;;  %1226 = vmatprep.subr.bf16.mxu1 %v1352_v3  ;;  %v1351_v9 = vld [vmem:[%s1858_s1] sm:$0xff]   ;;  %v1354_v12 = vld [vmem:[%s1860_s3 + $0x28] sm:$0xff]   ;;  %v1356_v16 = vld [vmem:[%s1860_s3 + $0x18] sm:$0xff]   ;;  %s1432_s18 = scalar_lea.vmem %s1811_s15, 2048 }
  0x16   : > { %1202 = vmatprep.subr.bf16.mxu0 %v1348_v1  ;;  %v281_v5 = vld [vmem:[%s1601_s8] sm:$0xff]  ;;  %v282_v6 = vld [vmem:[%s1601_s8 + $0x8] sm:$0xff]  ;;  %1227 = vmatpush3.bf16.msra.mxu1 %v1352_v3  ;;  %v283_v10 = vld [vmem:[%s1601_s8 + $0x10] sm:$0xff]  ;;  %p1433_p11 = scmp.ne.s32.totalorder %s1811_s15, %s1432_s18  ;;  %s1436_s20 = sshll.u32 %s1494_s19, 4  ;;  %s1437_s20 = int_to_ptr.vmem [resolvable:$false] %s1436_s20 }
  0x17   : > { %v297_v8 = vpack.c.bf16 %v282_v6, %v281_v5  ;;  %1228 = vmatprep.subr.bf16.mxu1 %v1353_v4  ;;  %v284_v11 = vld [vmem:[%s1601_s8 + $0x18] sm:$0xff]  ;;  %v285_v13 = vld [vmem:[%s1601_s8 + $0x20] sm:$0xff]  ;;  %v286_v14 = vld [vmem:[%s1601_s8 + $0x28] sm:$0xff]  ;;  %s1438_s21 = scalar_lea.vmem %s1437_s20, 4096  ;;  %p1439_p0 = scmp.lt.s32.totalorder %s1811_s15, %s1437_s20 }
  0x18   : > { %v1355_v15 = vld [vmem:[%s1860_s3 + $0x20] sm:$0xff]   ;;  %v298_v17 = vpack.c.bf16 %v284_v11, %v283_v10  ;;  %v299_v18 = vpack.c.bf16 %v286_v14, %v285_v13  ;;  %v287_v19 = vld [vmem:[%s1601_s8 + $0x30] sm:$0xff]  ;;  %v288_v20 = vld [vmem:[%s1601_s8 + $0x38] sm:$0xff]  ;;  %p1434_p12 = pnand %p1433_p11, %p1575_p5  ;;  %p1440_p1 = scmp.lt.s32.totalorder %s1438_s21, %s1432_s18 }
  0x19   : > { %1203 = vmatpush3.bf16.msra.mxu0 %v1348_v1  ;;  %1210 = vmatprep.mubr.msk.bf16.mxu0 %vm352_vm0, %v297_v8  ;;  %v289_v21 = vld [vmem:[%s1601_s8 + $0x40] sm:$0xff]  ;;  %v290_v22 = vld [vmem:[%s1601_s8 + $0x48] sm:$0xff]  ;;  %v300_v23 = vpack.c.bf16 %v288_v20, %v287_v19  ;;  %v291_v25 = vld [vmem:[%s1601_s8 + $0x50] sm:$0xff] }
  0x1a   : > { %1204 = vmatprep.subr.bf16.mxu0 %v1349_v2  ;;  %1229 = vmatpush3.bf16.msra.mxu1 %v1353_v4  ;;  %v301_v24 = vpack.c.bf16 %v290_v22, %v289_v21  ;;  %v292_v26 = vld [vmem:[%s1601_s8 + $0x58] sm:$0xff]  ;;  %v293_v27 = vld [vmem:[%s1601_s8 + $0x60] sm:$0xff]  ;;  %v294_v28 = vld [vmem:[%s1601_s8 + $0x68] sm:$0xff]  ;;  %p1435_p13 = pneg %p1434_p12  ;;  %p1441_p2 = por %p1440_p1, %p1439_p0 }
  0x1b   : > { %1230 = vmatprep.subr.bf16.mxu1 %v1354_v12  ;;  %v302_v29 = vpack.c.bf16 %v292_v26, %v291_v25  ;;  %v303_v30 = vpack.c.bf16 %v294_v28, %v293_v27  ;;  %v295_v31 = vld [vmem:[%s1601_s8 + $0x70] sm:$0xff]  ;;  %v296_v32 = vld [vmem:[%s1601_s8 + $0x78] sm:$0xff]  ;;  %v1358_v35 = vld [vmem:[%s1860_s3 + $0x8] sm:$0xff]  }
  0x1c   : > { %v304_v33 = vpack.c.bf16 %v296_v32, %v295_v31  ;;  %v1357_v34 = vld [vmem:[%s1860_s3 + $0x10] sm:$0xff]   ;;  %v1359_v36 = vld [vmem:[%s1860_s3] sm:$0xff]   ;;  %v1360_v37 = vld [vmem:[%s1862_s5 + $0x38] sm:$0xff]   ;;  %p1442_p3 = pnand %p1441_p2, %p1435_p13 }
  0x1d   : > { %1205 = vmatpush3.bf16.msra.mxu0 %v1349_v2  ;;  %v1361_v38 = vld [vmem:[%s1862_s5 + $0x30] sm:$0xff]   ;;  %v1362_v39 = vld [vmem:[%s1862_s5 + $0x28] sm:$0xff]   ;;  %v1363_v40 = vld [vmem:[%s1862_s5 + $0x20] sm:$0xff]  }
  0x1e   : > { %1206 = vmatprep.subr.bf16.mxu0 %v1350_v7  ;;  %1231 = vmatpush3.bf16.msra.mxu1 %v1354_v12  ;;  %v1669_v41 = vld [vmem:[%s1862_s5 + $0x18] sm:$0xff]   ;;  %v1117_v44 = vld [vmem:[%s1859_s2] ss:$0 sm:$0xff] }
  0x1f   : > { %1232 = vmatprep.subr.bf16.mxu1 %v1355_v15 }
  0x21   : > { %1207 = vmatpush3.bf16.msra.mxu0 %v1350_v7 }
  0x22   : > { %1208 = vmatprep.subr.bf16.mxu0 %v1351_v9  ;;  %1233 = vmatpush3.bf16.msra.mxu1 %v1355_v15 }
  0x23   : > { %1234 = vmatprep.subr.bf16.mxu1 %v1356_v16 }
  0x25   : > { %1209 = vmatpush3.bf16.msra.mxu0 %v1351_v9 }
  0x26   : > { %1235 = vmatpush3.bf16.msra.mxu1 %v1356_v16  ;;  %1258 = vmatprep.subr.bf16.mxu0 %v1360_v37 }
  0x27   : > { %1236 = vmatprep.subr.bf16.mxu1 %v1357_v34 }
  0x28   : > { %1211 = vmatmul.mubr.msk.bf16.vlgmr.msra.gmra.mxu0 %vm352_vm0, %v298_v17 }
  0x29   : > { %1214 = vmatprep.mubr.msk.bf16.mxu0 %vm352_vm0, %v299_v18  ;;  %1259 = vmatpush3.bf16.msra.mxu0 %v1360_v37 }
  0x2a   : > { %1237 = vmatpush3.bf16.msra.mxu1 %v1357_v34  ;;  %1260 = vmatprep.subr.bf16.mxu0 %v1361_v38 }
  0x2b   : > { %1238 = vmatprep.subr.bf16.mxu1 %v1358_v35 }
  0x2d   : > { %1261 = vmatpush3.bf16.msra.mxu0 %v1361_v38 }
  0x2e   : > { %1239 = vmatpush3.bf16.msra.mxu1 %v1358_v35  ;;  %1262 = vmatprep.subr.bf16.mxu0 %v1362_v39  ;;  %v1365_v35 = vld [vmem:[%s1862_s5 + $0x10] sm:$0xff]  }
  0x2f   : > { %1240 = vmatprep.subr.bf16.mxu1 %v1359_v36 }
  0x30   : > { %1215 = vmatmul.mubr.msk.bf16.gmra.mxu0 %vm352_vm0, %v300_v23 }
  0x31   : > { %1218 = vmatprep.mubr.msk.bf16.mxu0 %vm352_vm0, %v301_v24  ;;  %1263 = vmatpush3.bf16.msra.mxu0 %v1362_v39 }
  0x32   : > { %1241 = vmatpush3.bf16.msra.mxu1 %v1359_v36  ;;  %1264 = vmatprep.subr.bf16.mxu0 %v1363_v40  ;;  %v1366_v36 = vld [vmem:[%s1862_s5 + $0x8] sm:$0xff]  }
  0x33   : > { %1290 = vmatprep.subr.bf16.mxu1 %v1360_v37 }
  0x35   : > { %1265 = vmatpush3.bf16.msra.mxu0 %v1363_v40 }
  0x36   : > { %1266 = vmatprep.subr.bf16.mxu0 %v1669_v41 }
  0x38   : > { %1219 = vmatmul.mubr.msk.bf16.gmra.mxu0 %vm352_vm0, %v302_v29 }
  0x39   : > { %1222 = vmatprep.mubr.msk.bf16.mxu0 %vm352_vm0, %v303_v30  ;;  %1267 = vmatpush3.bf16.msra.mxu0 %v1669_v41 }
  0x3a   : > { %1268 = vmatprep.subr.bf16.mxu0 %v1365_v35 }
  0x3d   : > { %1269 = vmatpush3.bf16.msra.mxu0 %v1365_v35 }
  0x3e   : > { %1270 = vmatprep.subr.bf16.mxu0 %v1366_v36 }
  0x40   : > { %1223 = vmatmul.mubr.msk.bf16.gmra.mxu0 %vm352_vm0, %v304_v33 }
  0x41   : > { %1271 = vmatpush3.bf16.msra.mxu0 %v1366_v36 }
  0xe8   : > { %v1212_v42 = vpop.f32.mrf.mxu0 }
  0xe9   : > { %v420_v48 = vadd.f32 %v1212_v42, %v1117_v44 }
  0xea   : > { %v411_v43 = vpop.f32.mrf.mxu0 }
  0xeb   : > { %v412_v46 = vadd.f32 %v1117_v44, %v411_v43  ;;  %v476_v55 = vmax.f32 %v420_v48, 0.0 }
  0xec   : > { %v1213_v45 = vpop.f32.mrf.mxu0 }
  0xed   : > { %v423_v47 = vadd.f32 %v1213_v45, %v1117_v44  ;;  %v474_v53 = vmax.f32 %v412_v46, 0.0 }
  0xee   : > { %v414_v49 = vpop.f32.mrf.mxu0 }
  0xef   : > { %v415_v50 = vadd.f32 %v1117_v44, %v414_v49  ;;  %v477_v51 = vmax.f32 %v423_v47, 0.0 }
  0xf0   : > { %v1216_v52 = vpop.f32.mrf.mxu0 }
  0xf1   : > { %v475_v54 = vmax.f32 %v415_v50, 0.0  ;;  %v491_v58 = vpack.c.bf16 %v477_v51, %v476_v55  ;;  %v436_v62 = vadd.f32 %v1216_v52, %v1117_v44 }
  0xf2   : > { %v427_v56 = vpop.f32.mrf.mxu0 }
  0xf3   : > { %v490_v57 = vpack.c.bf16 %v475_v54, %v474_v53  ;;  %v428_v60 = vadd.f32 %v1117_v44, %v427_v56  ;;  %v480_v5 = vmax.f32 %v436_v62, 0.0 }
  0xf4   : > { %v1217_v59 = vpop.f32.mrf.mxu0 }
  0xf5   : > { %v439_v61 = vadd.f32 %v1217_v59, %v1117_v44  ;;  %1242 = vmatprep.mubr.bf16.mxu1 %v490_v57  ;;  %v478_v3 = vmax.f32 %v428_v60, 0.0 }
  0xf6   : > { %v430_v63 = vpop.f32.mrf.mxu0  ;;  %1243 = vmatmul.mubr.bf16.vlgmr.msra.gmra.mxu1 %v491_v58 }
  0xf7   : > { %v431_v0 = vadd.f32 %v1117_v44, %v430_v63  ;;  %1298 = vmatpush3.bf16.msra.mxu1 %v1360_v37  ;;  %v481_v1 = vmax.f32 %v439_v61, 0.0  ;;  %v1367_v37 = vld [vmem:[%s1862_s5] sm:$0xff]  }
  0xf8   : > { %v1220_v2 = vpop.f32.mrf.mxu0  ;;  %1291 = vmatprep.subr.bf16.mxu1 %v1361_v38  ;;  %1272 = vmatprep.subr.bf16.mxu0 %v1367_v37 }
  0xf9   : > { %v479_v4 = vmax.f32 %v431_v0, 0.0  ;;  %v493_v8 = vpack.c.bf16 %v481_v1, %v480_v5  ;;  %v452_v12 = vadd.f32 %v1220_v2, %v1117_v44  ;;  %1273 = vmatpush3.bf16.msra.mxu0 %v1367_v37 }
  0xfa   : > { %v443_v6 = vpop.f32.mrf.mxu0 }
  0xfb   : > { %v492_v7 = vpack.c.bf16 %v479_v4, %v478_v3  ;;  %1299 = vmatpush3.bf16.msra.mxu1 %v1361_v38  ;;  %v444_v10 = vadd.f32 %v1117_v44, %v443_v6  ;;  %v484_v19 = vmax.f32 %v452_v12, 0.0 }
  0xfc   : > { %v1221_v9 = vpop.f32.mrf.mxu0  ;;  %1292 = vmatprep.subr.bf16.mxu1 %v1362_v39 }
  0xfd   : > { %v455_v11 = vadd.f32 %v1221_v9, %v1117_v44  ;;  %1246 = vmatprep.mubr.bf16.mxu1 %v492_v7  ;;  %v482_v17 = vmax.f32 %v444_v10, 0.0 }
  0xfe   : > { %v446_v13 = vpop.f32.mrf.mxu0  ;;  %1247 = vmatmul.mubr.bf16.gmra.mxu1 %v493_v8 }
  0xff   : > { %v447_v14 = vadd.f32 %v1117_v44, %v446_v13  ;;  %1300 = vmatpush3.bf16.msra.mxu1 %v1362_v39  ;;  %v485_v15 = vmax.f32 %v455_v11, 0.0 }
 0x100   : > { %v1224_v16 = vpop.f32.mrf.mxu0  ;;  %1293 = vmatprep.subr.bf16.mxu1 %v1363_v40 }
 0x101   : > { %v483_v18 = vmax.f32 %v447_v14, 0.0  ;;  %v495_v22 = vpack.c.bf16 %v485_v15, %v484_v19  ;;  %v468_v26 = vadd.f32 %v1224_v16, %v1117_v44 }
 0x102   : > { %v459_v20 = vpop.f32.mrf.mxu0 }
 0x103   : > { %v494_v21 = vpack.c.bf16 %v483_v18, %v482_v17  ;;  %1301 = vmatpush3.bf16.msra.mxu1 %v1363_v40  ;;  %v460_v24 = vadd.f32 %v1117_v44, %v459_v20  ;;  %v488_v32 = vmax.f32 %v468_v26, 0.0  ;;  %v1131_v40 = vld [vmem:[%s1861_s4] ss:$0 sm:$0xff] }
 0x104   : > { %v1225_v23 = vpop.f32.mrf.mxu0  ;;  %1294 = vmatprep.subr.bf16.mxu1 %v1669_v41 }
 0x105   : > { %v471_v25 = vadd.f32 %v1225_v23, %v1117_v44  ;;  %1250 = vmatprep.mubr.bf16.mxu1 %v494_v21  ;;  %v486_v30 = vmax.f32 %v460_v24, 0.0 }
 0x106   : > { %v462_v27 = vpop.f32.mrf.mxu0  ;;  %1251 = vmatmul.mubr.bf16.gmra.mxu1 %v495_v22 }
 0x107   : > { %v463_v28 = vadd.f32 %v1117_v44, %v462_v27  ;;  %1302 = vmatpush3.bf16.msra.mxu1 %v1669_v41  ;;  %v489_v29 = vmax.f32 %v471_v25, 0.0 }
 0x108   : > { %1295 = vmatprep.subr.bf16.mxu1 %v1365_v35 }
 0x109   : > { %v487_v31 = vmax.f32 %v463_v28, 0.0  ;;  %v497_v34 = vpack.c.bf16 %v489_v29, %v488_v32 }
 0x10b   : > { %v496_v33 = vpack.c.bf16 %v487_v31, %v486_v30  ;;  %1303 = vmatpush3.bf16.msra.mxu1 %v1365_v35  ;;  %v1140_v31 = vld [vmem:[%s1863_s6] ss:$0 sm:$0xff] }
 0x10c   : > { %1296 = vmatprep.subr.bf16.mxu1 %v1366_v36 }
 0x10d   : > { %1254 = vmatprep.mubr.bf16.mxu1 %v496_v33 }
 0x10e   : > { %1255 = vmatmul.mubr.bf16.gmra.mxu1 %v497_v34 }
 0x10f   : > { %1304 = vmatpush3.bf16.msra.mxu1 %v1366_v36 }
 0x110   : > { %1297 = vmatprep.subr.bf16.mxu1 %v1367_v37 }
 0x113   : > { %1305 = vmatpush3.bf16.msra.mxu1 %v1367_v37 }
 0x1b6   : > { %v1244_v38 = vpop.f32.mrf.mxu1 }
 0x1b7   : > { %v612_v44 = vadd.f32 %v1244_v38, %v1131_v40 }
 0x1b8   : > { %v603_v39 = vpop.f32.mrf.mxu1 }
 0x1b9   : > { %v604_v42 = vadd.f32 %v1131_v40, %v603_v39  ;;  %v668_v51 = vmax.f32 %v612_v44, 0.0 }
 0x1ba   : > { %v1245_v41 = vpop.f32.mrf.mxu1 }
 0x1bb   : > { %v615_v43 = vadd.f32 %v1245_v41, %v1131_v40  ;;  %v666_v49 = vmax.f32 %v604_v42, 0.0 }
 0x1bc   : > { %v606_v45 = vpop.f32.mrf.mxu1 }
 0x1bd   : > { %v607_v46 = vadd.f32 %v1131_v40, %v606_v45  ;;  %v669_v47 = vmax.f32 %v615_v43, 0.0 }
 0x1be   : > { %v1248_v48 = vpop.f32.mrf.mxu1 }
 0x1bf   : > { %v667_v50 = vmax.f32 %v607_v46, 0.0  ;;  %v683_v54 = vpack.c.bf16 %v669_v47, %v668_v51  ;;  %v628_v58 = vadd.f32 %v1248_v48, %v1131_v40 }
 0x1c0   : > { %v619_v52 = vpop.f32.mrf.mxu1 }
 0x1c1   : > { %v682_v53 = vpack.c.bf16 %v667_v50, %v666_v49  ;;  %v620_v56 = vadd.f32 %v1131_v40, %v619_v52  ;;  %v672_v1 = vmax.f32 %v628_v58, 0.0 }
 0x1c2   : > { %v1249_v55 = vpop.f32.mrf.mxu1 }
 0x1c3   : > { %v631_v57 = vadd.f32 %v1249_v55, %v1131_v40  ;;  %1274 = vmatprep.mubr.bf16.mxu0 %v682_v53  ;;  %v670_v63 = vmax.f32 %v620_v56, 0.0 }
 0x1c4   : > { %v622_v59 = vpop.f32.mrf.mxu1  ;;  %1275 = vmatmul.mubr.bf16.vlgmr.msra.gmra.mxu0 %v683_v54 }
 0x1c5   : > { %v623_v60 = vadd.f32 %v1131_v40, %v622_v59  ;;  %v673_v61 = vmax.f32 %v631_v57, 0.0 }
 0x1c6   : > { %v1252_v62 = vpop.f32.mrf.mxu1 }
 0x1c7   : > { %v671_v0 = vmax.f32 %v623_v60, 0.0  ;;  %v685_v4 = vpack.c.bf16 %v673_v61, %v672_v1  ;;  %v644_v8 = vadd.f32 %v1252_v62, %v1131_v40 }
 0x1c8   : > { %v635_v2 = vpop.f32.mrf.mxu1 }
 0x1c9   : > { %v684_v3 = vpack.c.bf16 %v671_v0, %v670_v63  ;;  %v636_v6 = vadd.f32 %v1131_v40, %v635_v2  ;;  %v676_v15 = vmax.f32 %v644_v8, 0.0 }
 0x1ca   : > { %v1253_v5 = vpop.f32.mrf.mxu1 }
 0x1cb   : > { %v647_v7 = vadd.f32 %v1253_v5, %v1131_v40  ;;  %1278 = vmatprep.mubr.bf16.mxu0 %v684_v3  ;;  %v674_v13 = vmax.f32 %v636_v6, 0.0 }
 0x1cc   : > { %v638_v9 = vpop.f32.mrf.mxu1  ;;  %1279 = vmatmul.mubr.bf16.gmra.mxu0 %v685_v4 }
 0x1cd   : > { %v639_v10 = vadd.f32 %v1131_v40, %v638_v9  ;;  %v677_v11 = vmax.f32 %v647_v7, 0.0 }
 0x1ce   : > { %v1256_v12 = vpop.f32.mrf.mxu1 }
 0x1cf   : > { %v675_v14 = vmax.f32 %v639_v10, 0.0  ;;  %v687_v18 = vpack.c.bf16 %v677_v11, %v676_v15  ;;  %v660_v22 = vadd.f32 %v1256_v12, %v1131_v40 }
 0x1d0   : > { %v651_v16 = vpop.f32.mrf.mxu1 }
 0x1d1   : > { %v686_v17 = vpack.c.bf16 %v675_v14, %v674_v13  ;;  %v652_v20 = vadd.f32 %v1131_v40, %v651_v16  ;;  %v680_v28 = vmax.f32 %v660_v22, 0.0 }
 0x1d2   : > { %v1257_v19 = vpop.f32.mrf.mxu1 }
 0x1d3   : > { %v663_v21 = vadd.f32 %v1257_v19, %v1131_v40  ;;  %1282 = vmatprep.mubr.bf16.mxu0 %v686_v17  ;;  %v678_v26 = vmax.f32 %v652_v20, 0.0 }
 0x1d4   : > { %v654_v23 = vpop.f32.mrf.mxu1  ;;  %1283 = vmatmul.mubr.bf16.gmra.mxu0 %v687_v18 }
 0x1d5   : > { %v655_v24 = vadd.f32 %v1131_v40, %v654_v23  ;;  %v681_v25 = vmax.f32 %v663_v21, 0.0 }
 0x1d7   : > { %v679_v27 = vmax.f32 %v655_v24, 0.0  ;;  %v689_v30 = vpack.c.bf16 %v681_v25, %v680_v28 }
 0x1d9   : > { %v688_v29 = vpack.c.bf16 %v679_v27, %v678_v26 }
 0x1db   : > { %1286 = vmatprep.mubr.bf16.mxu1 %v688_v29 }
 0x1dc   : > { %1287 = vmatmul.mubr.bf16.vlgmr.msra.gmra.mxu1 %v689_v30 }
 0x284   : > { %v1276_v32 = vpop.f32.mrf.mxu0 }
 0x285   : > { %v804_v33 = vadd.f32 %v1276_v32, %v1140_v31 }
 0x286   : > { %v795_v34 = vpop.f32.mrf.mxu0 }
 0x287   : > { %v796_v35 = vadd.f32 %v1140_v31, %v795_v34  ;;  %862 = vmax.xlane.f32.xlu1 %v804_v33 }
 0x288   : > { %v1277_v36 = vpop.f32.mrf.mxu0 }
 0x289   : > { %v807_v37 = vadd.f32 %v1277_v36, %v1140_v31  ;;  %858 = vmax.xlane.f32.xlu0 %v796_v35 }
 0x28a   : > { %v798_v38 = vpop.f32.mrf.mxu0 }
 0x28b   : > { %v799_v39 = vadd.f32 %v1140_v31, %v798_v38  ;;  %864 = vmax.xlane.f32.xlu1 %v807_v37 }
 0x28c   : > { %v1280_v40 = vpop.f32.mrf.mxu0 }
 0x28d   : > { %860 = vmax.xlane.f32.xlu0 %v799_v39  ;;  %v820_v42 = vadd.f32 %v1280_v40, %v1140_v31 }
 0x28e   : > { %v811_v41 = vpop.f32.mrf.mxu0 }
 0x28f   : > { %v812_v46 = vadd.f32 %v1140_v31, %v811_v41 }
 0x290   : > { %v1281_v43 = vpop.f32.mrf.mxu0 }
 0x291   : > { %v823_v44 = vadd.f32 %v1281_v43, %v1140_v31  ;;  %870 = vmax.xlane.f32.xlu0 %v820_v42 }
 0x292   : > { %v814_v45 = vpop.f32.mrf.mxu0 }
 0x293   : > { %872 = vmax.xlane.f32.xlu1 %v823_v44  ;;  %v815_v48 = vadd.f32 %v1140_v31, %v814_v45 }
 0x294   : > { %v1284_v47 = vpop.f32.mrf.mxu0 }
 0x295   : > { %866 = vmax.xlane.f32.xlu0 %v812_v46  ;;  %v836_v50 = vadd.f32 %v1284_v47, %v1140_v31 }
 0x296   : > { %v827_v49 = vpop.f32.mrf.mxu0 }
 0x297   : > { %868 = vmax.xlane.f32.xlu1 %v815_v48  ;;  %v1695_v54 = vadd.f32 %v1140_v31, %v827_v49 }
 0x298   : > { %v1285_v51 = vpop.f32.mrf.mxu0 }
 0x299   : > { %v1693_v52 = vadd.f32 %v1285_v51, %v1140_v31  ;;  %878 = vmax.xlane.f32.xlu0 %v836_v50 }
 0x29a   : > { %v830_v53 = vpop.f32.mrf.mxu0 }
 0x29b   : > { %880 = vmax.xlane.f32.xlu1 %v1693_v52  ;;  %v1698_v56 = vadd.f32 %v1140_v31, %v830_v53 }
 0x29c   : > { %v1288_v55 = vpop.f32.mrf.mxu1 }
 0x29d   : > { %874 = vmax.xlane.f32.xlu0 %v1695_v54  ;;  %v1705_v61 = vadd.f32 %v1288_v55, %v1140_v31 }
 0x29e   : > { %v843_v57 = vpop.f32.mrf.mxu1 }
 0x29f   : > { %v1701_v58 = vadd.f32 %v1140_v31, %v843_v57  ;;  %876 = vmax.xlane.f32.xlu1 %v1698_v56 }
 0x2a0   : > { %v1289_v59 = vpop.f32.mrf.mxu1 }
 0x2a1   : > { %882 = vmax.xlane.f32.xlu0 %v1701_v58  ;;  %v1711_v63 = vadd.f32 %v1289_v59, %v1140_v31 }
 0x2a2   : > { %v846_v60 = vpop.f32.mrf.mxu1 }
 0x2a3   : > { %v1707_v62 = vadd.f32 %v1140_v31, %v846_v60 }
 0x2a5   : > { %884 = vmax.xlane.f32.xlu1 %v1707_v62  ;;  %886 = vmax.xlane.f32.xlu0 %v1705_v61 }
 0x2a9   : > { %888 = vmax.xlane.f32.xlu1 %v1711_v63 }
 0x310   : > { %v863_v0 = vpop.xlane.xlu1 %862 }
 0x311   : > { %v892_v1 = vsub.f32 %v804_v33, %v863_v0 }
 0x312   : > { %v859_v2 = vpop.xlane.xlu0 %858 }
 0x313   : > { %v910_v3 = vmul.f32 1.442695, %v892_v1  ;;  %v890_v4 = vsub.f32 %v796_v35, %v859_v2 }
 0x314   : > { %v865_v5 = vpop.xlane.xlu1 %864 }
 0x315   : > { %1368 = vpow2.f32 %v910_v3  ;;  %v906_v6 = vmul.f32 1.442695, %v890_v4  ;;  %v893_v7 = vsub.f32 %v807_v37, %v865_v5 }
 0x316   : > { %v861_v8 = vpop.xlane.xlu0 %860 }
 0x317   : > { %v912_v9 = vmul.f32 1.442695, %v893_v7  ;;  %v891_v10 = vsub.f32 %v799_v39, %v861_v8  ;;  %1370 = vpow2.f32 %v906_v6 }
 0x319   : > { %1372 = vpow2.f32 %v912_v9  ;;  %v908_v11 = vmul.f32 1.442695, %v891_v10 }
 0x31a   : > { %v871_v12 = vpop.xlane.xlu0 %870 }
 0x31b   : > { %v896_v13 = vsub.f32 %v820_v42, %v871_v12  ;;  %1374 = vpow2.f32 %v908_v11 }
 0x31c   : > { %v873_v14 = vpop.xlane.xlu1 %872 }
 0x31d   : > { %v918_v15 = vmul.f32 1.442695, %v896_v13  ;;  %v897_v16 = vsub.f32 %v823_v44, %v873_v14 }
 0x31e   : > { %v867_v17 = vpop.xlane.xlu0 %866 }
 0x31f   : > { %1376 = vpow2.f32 %v918_v15  ;;  %v920_v18 = vmul.f32 1.442695, %v897_v16  ;;  %v894_v19 = vsub.f32 %v812_v46, %v867_v17 }
 0x320   : > { %v869_v20 = vpop.xlane.xlu1 %868 }
 0x321   : > { %1378 = vpow2.f32 %v920_v18  ;;  %v914_v21 = vmul.f32 1.442695, %v894_v19  ;;  %v895_v22 = vsub.f32 %v815_v48, %v869_v20 }
 0x322   : > { %v1714_v23 = vpop.eup %1368  ;;  %v879_v24 = vpop.xlane.xlu0 %878 }
 0x323   : > { %1380 = vpow2.f32 %v914_v21  ;;  %v916_v25 = vmul.f32 1.442695, %v895_v22  ;;  %v900_v26 = vsub.f32 %v836_v50, %v879_v24  ;;  %942 = vadd.xlane.f32.xlu0 %v1714_v23 }
 0x324   : > { %v881_v27 = vpop.xlane.xlu1 %880  ;;  %v1717_v28 = vpop.eup %1370 }
 0x325   : > { %1382 = vpow2.f32 %v916_v25  ;;  %v926_v29 = vmul.f32 1.442695, %v900_v26  ;;  %v901_v30 = vsub.f32 %v1693_v52, %v881_v27 }
 0x326   : > { %v1720_v31 = vpop.eup %1372  ;;  %v875_v32 = vpop.xlane.xlu0 %874 }
 0x327   : > { %1384 = vpow2.f32 %v926_v29  ;;  %v928_v33 = vmul.f32 1.442695, %v901_v30  ;;  %v898_v34 = vsub.f32 %v1695_v54, %v875_v32  ;;  %944 = vadd.xlane.f32.xlu1 %v1720_v31  ;;  %938 = vadd.xlane.f32.xlu0 %v1717_v28 }
 0x328   : > { %v877_v35 = vpop.xlane.xlu1 %876  ;;  %v1726_v38 = vpop.eup %1374 }
 0x329   : > { %1386 = vpow2.f32 %v928_v33  ;;  %v922_v36 = vmul.f32 1.442695, %v898_v34  ;;  %v899_v37 = vsub.f32 %v1698_v56, %v877_v35 }
 0x32a   : > { %v883_v39 = vpop.xlane.xlu0 %882 }
 0x32b   : > { %1388 = vpow2.f32 %v922_v36  ;;  %v924_v40 = vmul.f32 1.442695, %v899_v37  ;;  %v902_v41 = vsub.f32 %v1701_v58, %v883_v39  ;;  %940 = vadd.xlane.f32.xlu1 %v1726_v38 }
 0x32c   : > { %v1730_v42 = vpop.eup %1376 }
 0x32d   : > { %1390 = vpow2.f32 %v924_v40  ;;  %v930_v43 = vmul.f32 1.442695, %v902_v41  ;;  %950 = vadd.xlane.f32.xlu0 %v1730_v42 }
 0x32e   : > { %v1733_v44 = vpop.eup %1378  ;;  %v885_v45 = vpop.xlane.xlu1 %884 }
 0x32f   : > { %v887_v46 = vpop.xlane.xlu0 %886  ;;  %1392 = vpow2.f32 %v930_v43  ;;  %v903_v47 = vsub.f32 %v1707_v62, %v885_v45  ;;  %952 = vadd.xlane.f32.xlu1 %v1733_v44 }
 0x330   : > { %v904_v48 = vsub.f32 %v1705_v61, %v887_v46  ;;  %v1738_v49 = vpop.eup %1380 }
 0x331   : > { %v932_v50 = vmul.f32 1.442695, %v903_v47  ;;  %946 = vadd.xlane.f32.xlu0 %v1738_v49 }
 0x332   : > { %v934_v51 = vmul.f32 1.442695, %v904_v48  ;;  %v1741_v52 = vpop.eup %1382  ;;  %v889_v53 = vpop.xlane.xlu1 %888 }
 0x333   : > { %1394 = vpow2.f32 %v932_v50  ;;  %v905_v54 = vsub.f32 %v1711_v63, %v889_v53  ;;  %948 = vadd.xlane.f32.xlu1 %v1741_v52 }
 0x334   : > { %v1745_v55 = vpop.eup %1384  ;;  %1396 = vpow2.f32 %v934_v51 }
 0x335   : > { %v936_v56 = vmul.f32 1.442695, %v905_v54  ;;  %958 = vadd.xlane.f32.xlu0 %v1745_v55 }
 0x336   : > { %v1748_v57 = vpop.eup %1386 }
 0x337   : > { %1398 = vpow2.f32 %v936_v56  ;;  %960 = vadd.xlane.f32.xlu1 %v1748_v57 }
 0x338   : > { %v1751_v58 = vpop.eup %1388 }
 0x339   : > { %954 = vadd.xlane.f32.xlu0 %v1751_v58 }
 0x33a   : > { %v1754_v59 = vpop.eup %1390 }
 0x33b   : > { %956 = vadd.xlane.f32.xlu1 %v1754_v59 }
 0x33c   : > { %v1757_v60 = vpop.eup %1392 }
 0x33d   : > { %962 = vadd.xlane.f32.xlu0 %v1757_v60 }
 0x340   : > { %v1760_v61 = vpop.eup %1394 }
 0x341   : > { %v1762_v62 = vpop.eup %1396  ;;  %964 = vadd.xlane.f32.xlu1 %v1760_v61 }
 0x342   : > { %966 = vadd.xlane.f32.xlu0 %v1762_v62 }
 0x344   : > { %v1766_v63 = vpop.eup %1398 }
 0x345   : > { %968 = vadd.xlane.f32.xlu1 %v1766_v63 }
 0x3ac   : > { %v943_v0 = vpop.xlane.xlu0 %942 }
 0x3ad   : > { %1400 = vrcp.f32 %v943_v0 }
 0x3b0   : > { %v945_v1 = vpop.xlane.xlu1 %944  ;;  %v939_v2 = vpop.xlane.xlu0 %938 }
 0x3b1   : > { %1402 = vrcp.f32 %v945_v1 }
 0x3b2   : > { %1404 = vrcp.f32 %v939_v2 }
 0x3b4   : > { %v941_v3 = vpop.xlane.xlu1 %940 }
 0x3b5   : > { %1406 = vrcp.f32 %v941_v3 }
 0x3b6   : > { %v951_v4 = vpop.xlane.xlu0 %950 }
 0x3b7   : > { %1408 = vrcp.f32 %v951_v4 }
 0x3b8   : > { %v953_v5 = vpop.xlane.xlu1 %952 }
 0x3b9   : > { %1410 = vrcp.f32 %v953_v5 }
 0x3ba   : > { %v1401_v6 = vpop.eup %1400  ;;  %v947_v7 = vpop.xlane.xlu0 %946 }
 0x3bb   : > { %v1004_v8 = vmul.f32 %v1401_v6, %v1714_v23  ;;  %1412 = vrcp.f32 %v947_v7 }
 0x3bc   : > { %v949_v9 = vpop.xlane.xlu1 %948 }
 0x3bd   : > { %1020 = vst [vmem:[%s1773_s13 + $0x10] sm:$0xff] %v1004_v8  ;;  %1414 = vrcp.f32 %v949_v9 }
 0x3be   : > { %v1403_v10 = vpop.eup %1402  ;;  %v959_v11 = vpop.xlane.xlu0 %958 }
 0x3bf   : > { %v1405_v12 = vpop.eup %1404  ;;  %v1005_v13 = vmul.f32 %v1403_v10, %v1720_v31  ;;  %1416 = vrcp.f32 %v959_v11 }
 0x3c0   : > { %v1002_v14 = vmul.f32 %v1405_v12, %v1717_v28  ;;  %v961_v15 = vpop.xlane.xlu1 %960 }
 0x3c1   : > { %1021 = vst [vmem:[%s1773_s13 + $0x18] sm:$0xff] %v1005_v13  ;;  %1418 = vrcp.f32 %v961_v15 }
 0x3c2   : > { %v1407_v16 = vpop.eup %1406  ;;  %1018 = vst [vmem:[%s1773_s13] sm:$0xff] %v1002_v14  ;;  %v955_v17 = vpop.xlane.xlu0 %954 }
 0x3c3   : > { %v1003_v18 = vmul.f32 %v1407_v16, %v1726_v38  ;;  %1420 = vrcp.f32 %v955_v17 }
 0x3c4   : > { %v1409_v19 = vpop.eup %1408  ;;  %v957_v20 = vpop.xlane.xlu1 %956 }
 0x3c5   : > { %1019 = vst [vmem:[%s1773_s13 + $0x8] sm:$0xff] %v1003_v18  ;;  %v1008_v21 = vmul.f32 %v1409_v19, %v1730_v42  ;;  %1422 = vrcp.f32 %v957_v20 }
 0x3c6   : > { %v1411_v22 = vpop.eup %1410  ;;  %v963_v23 = vpop.xlane.xlu0 %962 }
 0x3c7   : > { %1024 = vst [vmem:[%s1773_s13 + $0x30] sm:$0xff] %v1008_v21  ;;  %v1009_v24 = vmul.f32 %v1411_v22, %v1733_v44  ;;  %1424 = vrcp.f32 %v963_v23 }
 0x3c8   : > { %v1413_v25 = vpop.eup %1412 }
 0x3c9   : > { %1025 = vst [vmem:[%s1773_s13 + $0x38] sm:$0xff] %v1009_v24  ;;  %v1006_v26 = vmul.f32 %v1413_v25, %v1738_v49 }
 0x3ca   : > { %v1415_v27 = vpop.eup %1414  ;;  %v965_v28 = vpop.xlane.xlu1 %964 }
 0x3cb   : > { %1022 = vst [vmem:[%s1773_s13 + $0x20] sm:$0xff] %v1006_v26  ;;  %v1007_v29 = vmul.f32 %v1415_v27, %v1741_v52  ;;  %1426 = vrcp.f32 %v965_v28  ;;  %v967_v30 = vpop.xlane.xlu0 %966 }
 0x3cc   : > { %v1417_v31 = vpop.eup %1416  ;;  %1428 = vrcp.f32 %v967_v30 }
 0x3cd   : > { %1023 = vst [vmem:[%s1773_s13 + $0x28] sm:$0xff] %v1007_v29  ;;  %v1012_v32 = vmul.f32 %v1417_v31, %v1745_v55 }
 0x3ce   : > { %v1419_v33 = vpop.eup %1418  ;;  %v969_v34 = vpop.xlane.xlu1 %968 }
 0x3cf   : > { %1028 = vst [vmem:[%s1773_s13 + $0x50] sm:$0xff] %v1012_v32  ;;  %v1013_v35 = vmul.f32 %v1419_v33, %v1748_v57  ;;  %1430 = vrcp.f32 %v969_v34 }
 0x3d0   : > { %v1421_v36 = vpop.eup %1420 }
 0x3d1   : > { %1029 = vst [vmem:[%s1773_s13 + $0x58] sm:$0xff] %v1013_v35  ;;  %v1010_v37 = vmul.f32 %v1421_v36, %v1751_v58 }
 0x3d2   : > { %v1423_v38 = vpop.eup %1422 }
 0x3d3   : > { %1026 = vst [vmem:[%s1773_s13 + $0x40] sm:$0xff] %v1010_v37  ;;  %v1011_v39 = vmul.f32 %v1423_v38, %v1754_v59 }
 0x3d4   : > { %v1425_v40 = vpop.eup %1424 }
 0x3d5   : > { %1027 = vst [vmem:[%s1773_s13 + $0x48] sm:$0xff] %v1011_v39  ;;  %v1014_v41 = vmul.f32 %v1425_v40, %v1757_v60 }
 0x3d7   : > { %1030 = vst [vmem:[%s1773_s13 + $0x60] sm:$0xff] %v1014_v41 }
 0x3d8   : > { %v1427_v42 = vpop.eup %1426 }
 0x3d9   : > { %v1429_v43 = vpop.eup %1428  ;;  %v1015_v44 = vmul.f32 %v1427_v42, %v1760_v61 }
 0x3da   : > { %v1016_v45 = vmul.f32 %v1429_v43, %v1762_v62 }
 0x3db   : > { %1031 = vst [vmem:[%s1773_s13 + $0x68] sm:$0xff] %v1015_v44 }
 0x3dc   : > { %v1431_v46 = vpop.eup %1430  ;;  %1032 = vst [vmem:[%s1773_s13 + $0x70] sm:$0xff] %v1016_v45 }
 0x3dd   : > { %v1017_v47 = vmul.f32 %v1431_v46, %v1766_v63 }
 0x3df   : > { %1033 = vst [vmem:[%s1773_s13 + $0x78] sm:$0xff] %v1017_v47 }
 0x3e0   : > { %1445 = shalt.err (!%p1442_p3)
}
 0x3e1   : > { %s1446_s22 = scalar_lea.hbm %s1809_s17, 2048  ;;  %s1450_s9 = scalar_lea.hbm %s1864_s7, 4096 }
 0x3e2   : > { %p1447_p4 = scmp.ne.s32.totalorder %s1809_s17, %s1446_s22  ;;  %p1451_p9 = scmp.lt.s32.totalorder %s1809_s17, %s1864_s7 }
 0x3e3   : > { %p1452_p10 = scmp.lt.s32.totalorder %s1450_s9, %s1446_s22 }
 0x3e4   : > { %p1448_p7 = pnand %p1447_p4, %p1575_p5 }
 0x3e5   : > { %p1453_p11 = por %p1452_p10, %p1451_p9 }
 0x3e6   : > { %p1449_p8 = pneg %p1448_p7 }
 0x3e8   : > { %p1454_p12 = pnand %p1453_p11, %p1449_p8 }
 0x3ea   : > { %1457 = shalt.err (!%p1454_p12)
}
 0x3eb   : > { %s1495_s16 = smov 128   ;;  %s1496_s8 = smov 8  }
 0x3ec   : > { %1306 = dma.vmem_to_hbm [thread:$0]  (%p1575_p5), %s1811_s15, 2048, %s1809_s17, %s1817_s28, %s1495_s16, %s1495_s16, %s1496_s8  }
 0x3ed PF: > { %p1312_p13 = scmp.ge.s32.totalorder %s1492_s27, 2  ;;  %s1063_s18 = sand.u32 1, %s1480_s24  }
 0x3ee   : > { %s1064_s19 = scalar_lea.sflag [#allocation3], %s1063_s18 }
 0x3ef   : > { %p1309_p0 = pnand %p1312_p13, %p1579_p6 }
 0x3f1   : > { %p1310_p1 = pneg %p1309_p0 }
 0x3f3   : > { %1475 = dma.done.wait (%p1310_p1), %s1064_s19, 2048  }
 0x3f4   : > { %1477 = vsyncadd (%p1310_p1), %s1064_s19, 4294965248  ;;  %p17_p2 = scmp.ge.s32.totalorder %s1562_s30, 4   ;;  %s1867_s24 = smov %s1484_s25 }
 0x3f5   : > { %s1868_s25 = smov %s1488_s26  ;;  %s1869_s26 = smov %s1573_s10 }
 0x3f6   : > { %s1870_s27 = smov %s1562_s30  ;;  %19 = sbr.rel (!%p17_p2) target bundleno = 3 (0x3), region = 83 }
 0x3fb   :  { %1069 = vsyncpa [#allocation3], 1 }
 0x3fc   :  { %1071 = vsyncpa [#allocation3 + $0x1], 1 }

</bundles_post_ra>
